<compile_context>
chip_gen: v7x
topology: tpu7x:2x2x1
jax: 0.10.0
libtpu: 0.0.40
codegen_flags: <defaults>
</compile_context>

<pallas_src>
import functools

import jax
import jax.numpy as jnp
from jax import lax
from jax.experimental import pallas as pl
from jax.experimental.pallas import tpu as pltpu

_LANE = 128
_MAX_TILE_B = 16384          # 2 inputs * 2 bufs * 16 sublanes * 16384 * 4B ~ 4 MiB VMEM
_TINY_FALLBACK_ELEMS = 1024  # below this, launch/DMA overhead dominates -> pure JAX


def _round_up(x, m):
    return (x + m - 1) // m * m


def _hetero_loss_kernel(out_t_ref, var_t_ref, lab_t_ref,   # inputs  [C,T] [C,T] [1,T]
                        loss_ref,                           # output  [1,1] SMEM
                        acc_ref,                            # scratch [1]   SMEM
                        *, eps, batch, tile_b, inv_denom, approx_recip):
    i = pl.program_id(0)

    @pl.when(i == 0)
    def _init():
        acc_ref[0] = jnp.float32(0.0)

    mean = out_t_ref[...].astype(jnp.float32)      # [C, TILE_B]  (upcast bf16 here)
    var = var_t_ref[...].astype(jnp.float32)       # [C, TILE_B]
    labels = lab_t_ref[...]                        # [1, TILE_B] int32

    c, tb = mean.shape
    # One-hot folded straight into the residual (no materialized targets).
    class_ids = lax.broadcasted_iota(jnp.int32, (c, tb), 0)        # sublane iota
    diff = jnp.where(class_ids == labels, 1.0 - mean, -mean)

    v_eps = var + eps                              # variances assumed > 0 (softplus head)
    precision = pl.reciprocal(v_eps, approx=approx_recip)          # approx=True -> EUP vrcp
    elem = 0.5 * precision * diff * diff + 0.5 * jnp.log(v_eps)

    # Mask padded batch columns so they contribute exactly zero to the sum.
    col = lax.broadcasted_iota(jnp.int32, (c, tb), 1) + i * tile_b
    elem = jnp.where(col < batch, elem, 0.0)

    acc_ref[0] += jnp.sum(elem)
    # Running mean; the value left after the last grid step is the loss.
    loss_ref[0, 0] = acc_ref[0] * jnp.float32(inv_denom)


def _reference_loss(outputs, variances, labels, eps=1e-4):
    # Pure-JAX reference mirroring the PyTorch module (also the tiny-input path).
    outputs = outputs.astype(jnp.float32)
    variances = variances.astype(jnp.float32)
    targets = jax.nn.one_hot(labels, outputs.shape[-1], dtype=outputs.dtype)
    precision = 1.0 / (variances + eps)
    return jnp.mean(0.5 * precision * (targets - outputs) ** 2
                    + 0.5 * jnp.log(variances + eps))


def softmax_heteroscedastic_loss(outputs, variances, labels, eps=1e-4, *,
                                 tile_b=None, approx_reciprocal=False):
    """outputs/variances: [B, C] float (f32 or bf16), labels: [B] int -> scalar f32."""
    b, c = outputs.shape

    # Tiny problems are pure fixed overhead for a kernel; let XLA fuse them.
    if b * c < _TINY_FALLBACK_ELEMS:
        return _reference_loss(outputs, variances, labels, eps)

    if tile_b is None:
        tile_b = min(_MAX_TILE_B, _round_up(b, _LANE))
    assert tile_b % _LANE == 0, "tile_b must be a multiple of 128 lanes"

    b_pad = _round_up(b, tile_b)
    num_tiles = b_pad // tile_b

    # Lane-dense layout: batch on lanes, classes on sublanes.  Keep the input
    # dtype on the wire (bf16 stays bf16; the kernel upcasts to f32).
    out_t = jnp.transpose(outputs)                       # [C, B]
    var_t = jnp.transpose(variances)                     # [C, B]
    lab_t = labels.astype(jnp.int32).reshape(1, b)       # [1, B]
    if b_pad != b:
        pad = ((0, 0), (0, b_pad - b))
        out_t = jnp.pad(out_t, pad)
        var_t = jnp.pad(var_t, pad, constant_values=1.0)  # finite log/recip; masked anyway
        lab_t = jnp.pad(lab_t, pad)

    kernel = functools.partial(
        _hetero_loss_kernel,
        eps=float(eps), batch=b, tile_b=tile_b,
        inv_denom=1.0 / (b * c), approx_recip=approx_reciprocal)

    loss = pl.pallas_call(
        kernel,
        out_shape=jax.ShapeDtypeStruct((1, 1), jnp.float32),
        grid=(num_tiles,),
        in_specs=[
            pl.BlockSpec((c, tile_b), lambda i: (0, i)),   # outputs^T   (streamed)
            pl.BlockSpec((c, tile_b), lambda i: (0, i)),   # variances^T (streamed)
            pl.BlockSpec((1, tile_b), lambda i: (0, i)),   # labels row  (streamed)
        ],
        out_specs=pl.BlockSpec(memory_space=pltpu.SMEM),   # resident scalar result
        scratch_shapes=[pltpu.SMEM((1,), jnp.float32)],    # running sum across tiles
        compiler_params=pltpu.CompilerParams(
            dimension_semantics=("arbitrary",)),           # reduction axis (serial)
    )(out_t, var_t, lab_t)
    return loss[0, 0]


if __name__ == "__main__":
    key = jax.random.PRNGKey(0)
    k1, k2, k3 = jax.random.split(key, 3)

    B, C = 500, 10   # MNIST-like: 10 classes, non-multiple-of-128 batch (tests masking)
    outputs = jax.random.normal(k1, (B, C), dtype=jnp.float32)
    # variances come from a softplus/exp head in practice -> strictly positive
    variances = jax.nn.softplus(jax.random.normal(k2, (B, C), dtype=jnp.float32)) + 0.1
    labels = jax.random.randint(k3, (B,), 0, C, dtype=jnp.int32)

    ref = _reference_loss(outputs, variances, labels)

    # 1) Multi-tile path (grid=4, padded batch columns masked), exact reciprocal.
    loss_tiled = jax.block_until_ready(
        softmax_heteroscedastic_loss(outputs, variances, labels, tile_b=128))
    assert jnp.allclose(loss_tiled, ref, atol=1e-5, rtol=1e-5), (loss_tiled, ref)

    # 2) Auto-tile path (single tile) with the EUP approximate reciprocal.
    loss_approx = jax.block_until_ready(
        softmax_heteroscedastic_loss(outputs, variances, labels,
                                     approx_reciprocal=True))
    assert jnp.allclose(loss_approx, ref, atol=2e-2, rtol=2e-2), (loss_approx, ref)

    # 3) bf16 inputs accepted and upcast in-kernel (halves HBM bytes at scale).
    out_bf16 = outputs.astype(jnp.bfloat16)
    var_bf16 = variances.astype(jnp.bfloat16)
    ref_bf16 = _reference_loss(out_bf16, var_bf16, labels)
    loss_bf16 = jax.block_until_ready(
        softmax_heteroscedastic_loss(out_bf16, var_bf16, labels))
    assert jnp.allclose(loss_bf16, ref_bf16, atol=1e-4, rtol=1e-4), (loss_bf16, ref_bf16)

    print("KERNEL_OK")
</pallas_src>

<mosaic_0001>
module attributes {stable_mosaic.version = 11 : i64} {
  func.func @_hetero_loss_kernel(%arg0: i32, %arg1: memref<10x128xf32, #tpu.memory_space<vmem>>, %arg2: memref<10x128xf32, #tpu.memory_space<vmem>>, %arg3: memref<1x128xi32, #tpu.memory_space<vmem>>, %arg4: memref<1x1xf32, #tpu.memory_space<smem>>, %arg5: memref<1xf32, #tpu.memory_space<smem>>) attributes {dimension_semantics = [#tpu.dimension_semantics<arbitrary>], iteration_bounds = array<i64: 4>, scalar_prefetch = 0 : i64, scratch_operands = 1 : i64, tpu.core_type = #tpu.core_type<tc>, window_params = [{transform_indices = @transform_0, window_bounds = array<i64: 10, 128>}, {transform_indices = @transform_1, window_bounds = array<i64: 10, 128>}, {transform_indices = @transform_2, window_bounds = array<i64: 1, 128>}, {transform_indices = @transform_3, window_bounds = array<i64: 1, 1>}]} {
    %c0_i32 = arith.constant 0 : i32
    %0 = arith.cmpi eq, %arg0, %c0_i32 : i32
    %1 = arith.extui %0 : i1 to i32
    %c0_i32_0 = arith.constant 0 : i32
    %2 = arith.cmpi ne, %1, %c0_i32_0 : i32
    scf.if %2 {
      %cst_18 = arith.constant 0.000000e+00 : f32
      %c0_19 = arith.constant 0 : index
      %43 = memref.load %arg5[%c0_19] : memref<1xf32, #tpu.memory_space<smem>>
      memref.store %cst_18, %arg5[%c0_19] : memref<1xf32, #tpu.memory_space<smem>>
    } else {
    }
    %c0 = arith.constant 0 : index
    %c0_1 = arith.constant 0 : index
    %3 = vector.load %arg1[%c0, %c0_1] : memref<10x128xf32, #tpu.memory_space<vmem>>, vector<10x128xf32>
    %c0_2 = arith.constant 0 : index
    %c0_3 = arith.constant 0 : index
    %4 = vector.load %arg2[%c0_2, %c0_3] : memref<10x128xf32, #tpu.memory_space<vmem>>, vector<10x128xf32>
    %c0_4 = arith.constant 0 : index
    %c0_5 = arith.constant 0 : index
    %5 = vector.load %arg3[%c0_4, %c0_5] : memref<1x128xi32, #tpu.memory_space<vmem>>, vector<1x128xi32>
    %6 = tpu.iota {dimensions = array<i32: 0>} : vector<10x128xi32>
    %7 = vector.broadcast %5 : vector<1x128xi32> to vector<10x128xi32>
    %8 = arith.cmpi eq, %6, %7 : vector<10x128xi32>
    %cst = arith.constant 1.000000e+00 : f32
    %9 = vector.broadcast %cst : f32 to vector<10x128xf32>
    %10 = arith.subf %9, %3 : vector<10x128xf32>
    %cst_6 = arith.constant 0.000000e+00 : f32
    %11 = vector.broadcast %cst_6 : f32 to vector<10x128xf32>
    %12 = arith.subf %11, %3 : vector<10x128xf32>
    %13 = arith.select %8, %10, %12 : vector<10x128xi1>, vector<10x128xf32>
    %cst_7 = arith.constant 9.99999974E-5 : f32
    %14 = vector.broadcast %cst_7 : f32 to vector<10x128xf32>
    %15 = arith.addf %4, %14 : vector<10x128xf32>
    %16 = tpu.reciprocal %15 : vector<10x128xf32> -> vector<10x128xf32>
    %cst_8 = arith.constant 5.000000e-01 : f32
    %17 = vector.broadcast %cst_8 : f32 to vector<10x128xf32>
    %18 = arith.mulf %17, %16 : vector<10x128xf32>
    %19 = arith.mulf %18, %13 : vector<10x128xf32>
    %20 = arith.mulf %19, %13 : vector<10x128xf32>
    %21 = math.log %15 : vector<10x128xf32>
    %cst_9 = arith.constant 5.000000e-01 : f32
    %22 = vector.broadcast %cst_9 : f32 to vector<10x128xf32>
    %23 = arith.mulf %22, %21 : vector<10x128xf32>
    %24 = arith.addf %20, %23 : vector<10x128xf32>
    %25 = tpu.iota {dimensions = array<i32: 1>} : vector<10x128xi32>
    %c128_i32 = arith.constant 128 : i32
    %26 = arith.muli %arg0, %c128_i32 : i32
    %27 = vector.broadcast %26 : i32 to vector<10x128xi32>
    %28 = arith.addi %25, %27 : vector<10x128xi32>
    %c500_i32 = arith.constant 500 : i32
    %29 = vector.broadcast %c500_i32 : i32 to vector<10x128xi32>
    %30 = arith.cmpi slt, %28, %29 : vector<10x128xi32>
    %cst_10 = arith.constant 0.000000e+00 : f32
    %31 = vector.broadcast %cst_10 : f32 to vector<10x128xf32>
    %32 = arith.select %30, %24, %31 : vector<10x128xi1>, vector<10x128xf32>
    %c0_11 = arith.constant 0 : index
    %33 = memref.load %arg5[%c0_11] : memref<1xf32, #tpu.memory_space<smem>>
    %34 = vector.shape_cast %32 : vector<10x128xf32> to vector<1x10x128xf32>
    %cst_12 = arith.constant dense<0.000000e+00> : vector<1xf32>
    %35 = vector.multi_reduction <add>, %34, %cst_12 [1, 2] : vector<1x10x128xf32> to vector<1xf32>
    %36 = vector.shape_cast %35 : vector<1xf32> to vector<1x1x1xf32>
    %37 = vector.extract %36[0, 0, 0] : f32 from vector<1x1x1xf32>
    %38 = arith.addf %33, %37 : f32
    %c0_13 = arith.constant 0 : index
    %39 = memref.load %arg5[%c0_13] : memref<1xf32, #tpu.memory_space<smem>>
    memref.store %38, %arg5[%c0_13] : memref<1xf32, #tpu.memory_space<smem>>
    %c0_14 = arith.constant 0 : index
    %40 = memref.load %arg5[%c0_14] : memref<1xf32, #tpu.memory_space<smem>>
    %cst_15 = arith.constant 2.000000e-04 : f32
    %41 = arith.mulf %40, %cst_15 : f32
    %c0_16 = arith.constant 0 : index
    %c0_17 = arith.constant 0 : index
    %42 = memref.load %arg4[%c0_16, %c0_17] : memref<1x1xf32, #tpu.memory_space<smem>>
    memref.store %41, %arg4[%c0_16, %c0_17] : memref<1x1xf32, #tpu.memory_space<smem>>
    return
  }
  func.func @transform_0(%arg0: i32) -> (i32, i32) {
    %c0_i32 = arith.constant 0 : i32
    %c0_i32_0 = arith.constant 0 : i32
    return %c0_i32, %arg0 : i32, i32
  }
  func.func @transform_1(%arg0: i32) -> (i32, i32) {
    %c0_i32 = arith.constant 0 : i32
    %c0_i32_0 = arith.constant 0 : i32
    return %c0_i32, %arg0 : i32, i32
  }
  func.func @transform_2(%arg0: i32) -> (i32, i32) {
    %c0_i32 = arith.constant 0 : i32
    %c0_i32_0 = arith.constant 0 : i32
    return %c0_i32, %arg0 : i32, i32
  }
  func.func @transform_3(%arg0: i32) -> (i32, i32) {
    %c0_i32 = arith.constant 0 : i32
    %c0_i32_0 = arith.constant 0 : i32
    %c0_i32_1 = arith.constant 0 : i32
    return %c0_i32, %c0_i32_0 : i32, i32
  }
}

</mosaic_0001>

<bundles_post_ra>
// kernel: tpu_custom_call.1
= control target key start
LH: loop header
LB: loop body
LE: loop exit
PB: predicated region body
PF: predicated region fallthrough
CT: control target
= control target key end

     0   :  { %8 = vsyncpa [#allocation4], 0  ;;  %s809_s0 = inlined_call_operand.hbm [shape: f32[10,512], index: 0, kind: input, shape index: {}]   ;;  %s810_s1 = inlined_call_operand.hbm [shape: f32[10,512], index: 1, kind: input, shape index: {}]   ;;  %s811_s2 = inlined_call_operand.vmem [shape: s32[1,512], index: 2, kind: input, shape index: {}]   ;;  %s812_s3 = inlined_call_operand.hbm [shape: f32[1,1], index: 3, kind: output, shape index: {}]  }
   0x1   :  { %10 = vsyncpa [#allocation4 + $0x1], 0 }
   0x2   :  { %11 = vsyncpa [#allocation7], 0 }
   0x3   :  { %13 = vsyncpa [#allocation7 + $0x1], 0 }
   0x4   :  { %14 = vsyncpa [#allocation5], 0  ;;  %s617_s12 = smov 0   ;;  %s619_s13 = smov 0  }
   0x5   :  { %s621_s14 = smov 0   ;;  %s623_s15 = smov 0  }
   0x6 LB: > { %s636_s16 = sadd.s32 4294967295, %s588_s15   ;;  %s639_s17 = sadd.s32 1, %s588_s15   ;;  %s588_s15 = sphi %s623_s15, %s823_s15   ;;  %s584_s14 = sphi %s621_s14, %s822_s14   ;;  %s580_s13 = sphi %s619_s13, %s821_s13   ;;  %s576_s12 = sphi %s617_s12, %s820_s12  }
   0x7   : > { %s24_s18 = ssub.s32 %s588_s15, %s639_s17  ;;  %s27_s19 = sadd.s32 1, %s584_s14 }
   0x8   : > { %p25_p0 = scmp.eq.s32.totalorder %s24_s18, 0  ;;  %p34_p1 = scmp.ne.s32.totalorder %s584_s14, %s580_s13 }
   0x9   : > { %p35_p2 = scmp.eq.s32.totalorder %s588_s15, 0  ;;  %p40_p3 = scmp.ne.s32.totalorder %s580_s13, %s576_s12 }
   0xa   : > { %s649_s20 = scalar_select %p25_p0, %s584_s14, %s27_s19  }
   0xb   : > { %p36_p4 = por %p35_p2, %p34_p1  ;;  %p813_p5 = scmp.eq.s32.totalorder %s636_s16, 0 }
   0xc   : > { %p425_p6 = scmp.lt.s32.totalorder %s588_s15, 4  ;;  %s660_s22 = sand.u32 1, %s584_s14  }
   0xd   : > { %p655_p7 = por %p813_p5, %p40_p3  ;;  %s392_s23 = sshll.u32 %s660_s22, 4 }
   0xe   : > { %s393_s24 = sshll.u32 %s588_s15, 7  ;;  %s141_s28 = scalar_lea.vmem [#allocation3], %s392_s23 }
   0xf   : > { %s815_s21 = scalar_select %p655_p7, 1, 0 }
  0x10   : > { %s669_s27 = scalar_lea.hbm %s809_s0, %s393_s24  ;;  %s147_s29 = sshll.u32 %s141_s28, 4  ;;  %s673_s29 = int_to_ptr.vmem [resolvable:$true] %s147_s29 }
  0x11   : > { %p675_p8 = pnand %p425_p6, %p36_p4  ;;  %s138_s4 = scalar_lea.sflag [#allocation4], %s660_s22 }
  0x12   : > { %s474_s5 = scalar_lea.hbm %s669_s27, 256  ;;  %s479_s8 = scalar_lea.hbm %s809_s0, 1024 }
  0x13   : > { %p475_p9 = scmp.ne.s32.totalorder %s669_s27, %s474_s5  ;;  %p476_p10 = pneg %p675_p8 }
  0x14   : > { %p480_p13 = scmp.lt.u32.totalorder %s669_s27, %s809_s0  ;;  %p481_p0 = scmp.lt.u32.totalorder %s479_s8, %s474_s5 }
  0x15   : > { %p477_p11 = pnand %p476_p10, %p475_p9  ;;  %p483_p2 = scmp.lt.u32.totalorder %s474_s5, %s669_s27 }
  0x16   : > { %p482_p1 = por %p481_p0, %p480_p13 }
  0x17   : > { %p478_p12 = pneg %p477_p11 }
  0x18   : > { %p484_p3 = por %p483_p2, %p482_p1 }
  0x1a   : > { %p485_p4 = pnand %p484_p3, %p478_p12 }
  0x1c   : > { %488 = shalt.err (!%p485_p4)
}
  0x1d   : > { %s489_s11 = scalar_lea.vmem %s673_s29, 256  ;;  %s590_s12 = smov [#allocation3]  }
  0x1e   : > { %p490_p6 = scmp.ne.s32.totalorder %s673_s29, %s489_s11  ;;  %s494_s18 = sshll.u32 %s590_s12, 4  ;;  %s495_s18 = int_to_ptr.vmem [resolvable:$false] %s494_s18 }
  0x1f   : > { %s496_s19 = scalar_lea.vmem %s495_s18, 512  ;;  %p497_p5 = scmp.lt.s32.totalorder %s673_s29, %s495_s18 }
  0x20   : > { %p492_p9 = pnand %p490_p6, %p476_p10  ;;  %p498_p13 = scmp.lt.s32.totalorder %s496_s19, %s489_s11 }
  0x22   : > { %p493_p11 = pneg %p492_p9  ;;  %p499_p0 = por %p498_p13, %p497_p5 }
  0x24   : > { %p500_p1 = pnand %p499_p0, %p493_p11 }
  0x26   : > { %503 = shalt.err (!%p500_p1)
}
  0x27   : > { %s591_s25 = smov 512   ;;  %s592_s26 = smov 128  }
  0x28   : > { %s593_s28 = smov 8   ;;  %p396_p5 = scmp.ge.s32.totalorder %s588_s15, 1 }
  0x29   : > { %421 = dma.hbm_to_vmem [thread:$0]  (!%p675_p8), %s669_s27, 256, %s673_s29, %s138_s4, %s591_s25, %s592_s26, %s593_s28  }
  0x2a   : > { %p181_p12 = scmp.lt.s32.totalorder %s588_s15, 5  ;;  %s721_s8 = scalar_lea.hbm %s810_s1, %s393_s24 }
  0x2b   : > { %s161_s9 = scalar_lea.vmem [#allocation6], %s392_s23  ;;  %s158_s27 = scalar_lea.sflag [#allocation7], %s660_s22 }
  0x2c   : > { %p712_p2 = pnand %p396_p5, %p181_p12  ;;  %s167_s10 = sshll.u32 %s161_s9, 4  ;;  %s725_s10 = int_to_ptr.vmem [resolvable:$true] %s167_s10 }
  0x2d   : > { %s504_s29 = scalar_lea.hbm %s721_s8, 256  ;;  %s509_s24 = scalar_lea.hbm %s810_s1, 1024 }
  0x2e   : > { %p505_p3 = scmp.ne.s32.totalorder %s721_s8, %s504_s29  ;;  %p510_p9 = scmp.lt.u32.totalorder %s721_s8, %s810_s1 }
  0x2f   : > { %p511_p11 = scmp.lt.u32.totalorder %s509_s24, %s504_s29  ;;  %p513_p0 = scmp.lt.u32.totalorder %s504_s29, %s721_s8 }
  0x30   : > { %p507_p4 = pnand %p505_p3, %p476_p10 }
  0x31   : > { %p512_p13 = por %p511_p11, %p510_p9 }
  0x32   : > { %p508_p6 = pneg %p507_p4 }
  0x33   : > { %p514_p1 = por %p513_p0, %p512_p13 }
  0x35   : > { %p515_p5 = pnand %p514_p1, %p508_p6 }
  0x37   : > { %518 = shalt.err (!%p515_p5)
}
  0x38   : > { %s519_s23 = scalar_lea.vmem %s725_s10, 256  ;;  %s594_s18 = smov [#allocation6]  }
  0x39   : > { %p520_p12 = scmp.ne.s32.totalorder %s725_s10, %s519_s23  ;;  %s524_s19 = sshll.u32 %s594_s18, 4  ;;  %s525_s19 = int_to_ptr.vmem [resolvable:$false] %s524_s19 }
  0x3a   : > { %s526_s6 = scalar_lea.vmem %s525_s19, 512  ;;  %p527_p7 = scmp.lt.s32.totalorder %s725_s10, %s525_s19 }
  0x3b   : > { %p522_p3 = pnand %p520_p12, %p476_p10  ;;  %p528_p9 = scmp.lt.s32.totalorder %s526_s6, %s519_s23 }
  0x3d   : > { %p523_p4 = pneg %p522_p3  ;;  %p529_p11 = por %p528_p9, %p527_p7 }
  0x3f   : > { %p530_p13 = pnand %p529_p11, %p523_p4 }
  0x41   : > { %533 = shalt.err (!%p530_p13)
}
  0x42   : > { %424 = dma.hbm_to_vmem [thread:$0]  (!%p675_p8), %s721_s8, 256, %s725_s10, %s158_s27, %s591_s25, %s592_s26, %s593_s28  }
  0x43   : > { %185 = sbr.rel (%p712_p2) target bundleno = 319 (0x13f), region = 32  ;;  %s187_s7 = sand.u32 (!%p712_p2), 1, %s580_s13  }
  0x44   : > { %s397_s9 = sshll.u32 (!%p712_p2), %s187_s7, 4  ;;  %s188_s29 = scalar_lea.sflag (!%p712_p2), [#allocation4], %s187_s7 }
  0x45   : > { %s191_s15 = scalar_lea.vmem (!%p712_p2), [#allocation3], %s397_s9  ;;  %p818_p7 = scmp.ne.s32.totalorder (!%p712_p2), %s815_s21, 0 }
  0x4a   : > { %563 = dma.done.wait (%p818_p7), %s188_s29, 256  }
  0x4b   : > { %565 = vsyncadd (%p818_p7), %s188_s29, 4294967040  ;;  %s197_s30 = scalar_lea.sflag [#allocation7], %s187_s7  ;;  %s200_s22 = scalar_lea.vmem [#allocation6], %s397_s9 }
  0x4c   : > { %567 = dma.done.wait (%p818_p7), %s197_s30, 256  }
  0x4d   : > { %569 = vsyncadd (%p818_p7), %s197_s30, 4294967040  ;;  %p226_p8 = scmp.lt.s32.totalorder %s636_s16, 3  ;;  %v237_v0 = vld [vmem:[%s200_s22] sm:$0xff]  ;;  %v238_v1 = vld [vmem:[%s200_s22 + $0x8] sm:$0x3]  ;;  %v240_v2 = vlaneseq  ;;  %s401_s21 = sshll.u32 %s636_s16, 7 }
  0x4e   : > { %v255_v3 = vadd.f32 0.0001, %v237_v0  ;;  %v256_v4 = vadd.f32 0.0001, %v238_v1  ;;  %v235_v6 = vld [vmem:[%s191_s15] sm:$0xff]  ;;  %v276_v15 = vstv %s401_s21  ;;  %vm282_vm3 = vcmask 1041408  }
  0x4f   : > { %s227_s25 = scalar_select %p226_p8, %s636_s16, 3  ;;  %v241_v5 = vshrl.u32 %v240_v2, 7  ;;  %v236_v7 = vld [vmem:[%s191_s15 + $0x8] sm:$0x3]  ;;  %v249_v10 = vsub.f32 1.0, %v235_v6  ;;  %v251_v11 = vsub.f32 0.0, %v235_v6 }
  0x50   : > { %466 = vrcp.f32 %v255_v3  ;;  %v250_v12 = vsub.f32 1.0, %v236_v7  ;;  %v252_v13 = vsub.f32 0.0, %v236_v7  ;;  %v274_v14 = vand.u32 127, %v240_v2  ;;  %s595_s8 = smov 0.0   ;;  %p819_p10 = scmp.eq.s32.totalorder %s636_s16, 0 }
  0x51   : > { %s228_s5 = scalar_lea.vmem %s811_s2, %s227_s25  ;;  %468 = vrcp.f32 %v256_v4  ;;  %v242_v9 = vadd.s32 8, %v241_v5  ;;  %p427_p2 = scmp.eq.s32.totalorder %s636_s16, 3 }
  0x52   : > { %470 = vlog2.f32 %v255_v3  ;;  %v400_v8 = vld [vmem:[%s228_s5] ss:$0 sm:$0xff]  ;;  %v277_v23 = vadd.s32 %v276_v15, %v274_v14  ;;  %413 = sst [smem:[#allocation2]] (%p819_p10), %s595_s8  ;;  %s534_s23 = scalar_lea.hbm %s812_s3, 16 }
  0x53   : > { %472 = vlog2.f32 %v256_v4  ;;  %vm247_vm0 = vcmp.eq.s32.totalorder %v241_v5, %v400_v8  ;;  %vm248_vm1 = vcmp.eq.s32.totalorder %v242_v9, %v400_v8  ;;  %s281_s10 = sld [smem:[#allocation2]]  ;;  %p535_p6 = scmp.ne.s32.totalorder %s812_s3, %s534_s23 }
  0x54   : > { %v253_v17 = vsel %vm247_vm0, %v249_v10, %v251_v11  ;;  %v254_v19 = vsel %vm248_vm1, %v250_v12, %v252_v13  ;;  %vm278_vm2 = vcmp.lt.s32.totalorder %v277_v23, 500  ;;  %p540_p5 = scmp.lt.u32.totalorder %s534_s23, %s812_s3 }
  0x55   : > { %p536_p0 = pnand %p535_p6, %p427_p2 }
  0x57   : > { %p537_p1 = pneg %p536_p0 }
  0x59   : > { %p542_p12 = pnand %p540_p5, %p537_p1 }
  0x5a   : > { %v467_v16 = vpop.eup %466 }
  0x5b   : > { %v469_v18 = vpop.eup %468  ;;  %v259_v20 = vmul.f32 0.5, %v467_v16 }
  0x5c   : > { %v471_v21 = vpop.eup %470  ;;  %v260_v22 = vmul.f32 0.5, %v469_v18 }
  0x5d   : > { %v473_v24 = vpop.eup %472  ;;  %v261_v25 = vmul.f32 %v259_v20, %v253_v17  ;;  %v266_v26 = vmul.f32 0.6931472, %v471_v21 }
  0x5e   : > { %v262_v27 = vmul.f32 %v260_v22, %v254_v19  ;;  %v268_v28 = vmul.f32 0.6931472, %v473_v24 }
  0x5f   : > { %v263_v29 = vmul.f32 %v261_v25, %v253_v17  ;;  %v269_v30 = vmul.f32 0.5, %v266_v26 }
  0x60   : > { %v264_v31 = vmul.f32 %v262_v27, %v254_v19  ;;  %v270_v32 = vmul.f32 0.5, %v268_v28 }
  0x61   : > { %v271_v33 = vadd.f32 %v269_v30, %v263_v29 }
  0x62   : > { %v272_v34 = vadd.f32 %v270_v32, %v264_v31 }
  0x63   : > { %v279_v35 = vsel %vm278_vm2, %v271_v33, 0.0 }
  0x64   : > { %v280_v36 = vsel %vm278_vm2, %v272_v34, 0.0 }
  0x65   : > { %v283_v37 = vsel %vm282_vm3, %v280_v36, 0.0 }
  0x66   : > { %v284_v38 = vadd.f32 %v283_v37, %v279_v35 }
  0x68   : > { %285 = vadd.xlane.f32.xlu0 %v284_v38 }
  0xf5   : > { %v286_v39 = vpop.xlane.xlu0 %285 }
  0xf6   : > { %v287_v40 = vrot.slane %v286_v39, 4 }
  0xf8   : > { %v288_v41 = vadd.f32 %v287_v40, %v286_v39 }
  0xfa   : > { %v289_v42 = vrot.slane %v288_v41, 2 }
  0xfc   : > { %v290_v43 = vadd.f32 %v289_v42, %v288_v41 }
  0xfe   : > { %v291_v44 = vrot.slane %v290_v43, 1 }
 0x100   : > { %v292_v45 = vadd.f32 %v291_v44, %v290_v43 }
 0x102   : > { %406 = vpush %v292_v45 }
 0x133   : > { %s407_s27 = spop %406 }
 0x134   : > { %s294_s4 = sadd.f32 %s407_s27, %s281_s10 }
 0x136   : > { %296 = sst [smem:[#allocation2]] %s294_s4  ;;  %s298_s24 = smul.f32 0.0002, %s294_s4 }
 0x138   : > { %300 = sst [smem:[#allocation8]] %s298_s24 }
 0x139   : > { %545 = shalt.err (!%p542_p12)
}
 0x13a   : > { %s596_s9 = smov [#allocation8]  }
 0x13b   : > { %415 = dma.smem_to_hbm (%p427_p2), %s596_s9, 16, %s812_s3, [#allocation5]  }
 0x13c   : > { %571 = dma.done.wait (%p427_p2), [#allocation5], 16  }
 0x13d   : > { %573 = vsyncadd (%p427_p2), [#allocation5], 4294967280 }
 0x13e   : > { %314 = sfence }
 0x13f PF: > { %p17_p3 = scmp.ge.s32.totalorder %s639_s17, 6   ;;  %s820_s12 = smov %s580_s13 }
 0x140   : > { %s821_s13 = smov %s584_s14  ;;  %s822_s14 = smov %s649_s20 }
 0x141   : > { %s823_s15 = smov %s639_s17  ;;  %19 = sbr.rel (!%p17_p3) target bundleno = 6 (0x6), region = 92 }
 0x148   :  { %320 = vsyncpa [#allocation4], 1 }
 0x149   :  { %322 = vsyncpa [#allocation4 + $0x1], 1 }
 0x14a   :  { %323 = vsyncpa [#allocation7], 1 }
 0x14b   :  { %325 = vsyncpa [#allocation7 + $0x1], 1 }
 0x14c   :  { %326 = vsyncpa [#allocation5], 1 }
 0x14d   :  { %328 = vsyncpa [#allocation5 + $0x1], 1 }

</bundles_post_ra>
